<compile_context>
chip_gen: v6e
topology: v6e:2x2x1
jax: 0.10.0
libtpu: 0.0.40
codegen_flags: <defaults>
</compile_context>

<pallas_src>
import functools

import jax
import jax.numpy as jnp
from jax.experimental import pallas as pl
from jax.experimental.pallas import tpu as pltpu

HIDDEN = 128
DROPOUT_P = 0.1
# Batch tile: multiple of 8; sized so double-buffered x/rand/out tiles fit the
# 32 MiB scoped-VMEM budget even on v7x (64 MiB physical VMEM).
DEFAULT_TILE_B = 1024


def _round_up(n: int, m: int) -> int:
    return ((n + m - 1) // m) * m


def _rewards_kernel(*refs, dropout: bool, p: float):
    if dropout:
        x_ref, rand_ref, w1_ref, b1_ref, w2_ref, b2_ref, o_ref = refs
    else:
        x_ref, w1_ref, b1_ref, w2_ref, b2_ref, o_ref = refs
        rand_ref = None

    # Layer 1 on the MXU: (TILE_B, D) @ (D, 128); bias + ReLU on the VPU.
    h = jnp.dot(x_ref[...], w1_ref[...], preferred_element_type=jnp.float32)
    h = jnp.maximum(h + b1_ref[...], 0.0)

    if dropout:
        # Inverted dropout (torch.nn.Dropout semantics): zero w.p. p, scale
        # survivors by 1/(1-p).  Uniform randoms are streamed in per batch
        # tile, so every tile (and every megacore half) gets its own mask.
        keep = rand_ref[...] >= p
        h = jnp.where(keep, h * (1.0 / (1.0 - p)), 0.0)

    # Layer 2: a (TILE_B,128)x(128,1) MXU matmul would use 1/256 of the MXU
    # columns; do it as a VPU multiply + XLU lane-reduce instead.
    out = jnp.sum(h * w2_ref[...], axis=-1, keepdims=True) + b2_ref[0]
    # NOTE: the (TILE_B, 1) store is lane-sparse (masked vst); accepted
    # knowingly — output volume is only 4*B bytes, negligible vs the x stream.
    o_ref[...] = out.astype(o_ref.dtype)


def rewards_model_forward(params, x, *, dropout=True, seed=0,
                          tile_b=DEFAULT_TILE_B):
    """Forward pass of rewards_model as a single batch-tiled Pallas kernel.

    params: dict with w1 (D,128), b1 (1,128), w2 (1,128) [row], b2 (1,)
    x:      (B, D) float32
    """
    B, D = x.shape
    assert params["w1"].shape == (D, HIDDEN)

    tb = min(tile_b, _round_up(B, 8))          # sublane-aligned batch tile
    b_pad = _round_up(B, tb)
    grid = (b_pad // tb,)

    if b_pad != B:
        x = jnp.pad(x, ((0, b_pad - B), (0, 0)))

    kernel = functools.partial(_rewards_kernel, dropout=dropout, p=DROPOUT_P)

    # x / rand / out are streamed per tile; weights stay resident (index_map
    # returns the same block every step, so no re-DMA).
    in_specs = [pl.BlockSpec((tb, D), lambda i: (i, 0))]            # x
    args = [x]
    if dropout:
        rnd = jax.random.uniform(jax.random.PRNGKey(seed), (b_pad, HIDDEN),
                                 jnp.float32)
        in_specs.append(pl.BlockSpec((tb, HIDDEN), lambda i: (i, 0)))
        args.append(rnd)
    in_specs += [
        pl.BlockSpec((D, HIDDEN), lambda i: (0, 0)),                # w1
        pl.BlockSpec((1, HIDDEN), lambda i: (0, 0)),                # b1
        pl.BlockSpec((1, HIDDEN), lambda i: (0, 0)),                # w2 row
        pl.BlockSpec(memory_space=pltpu.MemorySpace.SMEM),          # b2 scalar
    ]
    args += [params["w1"], params["b1"], params["w2"], params["b2"]]

    out = pl.pallas_call(
        kernel,
        grid=grid,
        out_shape=jax.ShapeDtypeStruct((b_pad, 1), jnp.float32),
        in_specs=in_specs,
        out_specs=pl.BlockSpec((tb, 1), lambda i: (i, 0)),
        compiler_params=pltpu.CompilerParams(
            dimension_semantics=("parallel",),      # megacore split on v7x
            vmem_limit_bytes=32 * 1024 * 1024,      # explicit budget, headroom
        ),
    )(*args)

    return out[:B] if b_pad != B else out


def init_params(key, n_observations, hidden=HIDDEN):
    """Deterministic init mimicking nn.Linear default (U[-1/sqrt(fan_in), +])."""
    k1, k2, k3, k4 = jax.random.split(key, 4)
    bound1 = 1.0 / jnp.sqrt(jnp.float32(n_observations))
    bound2 = 1.0 / jnp.sqrt(jnp.float32(hidden))
    return {
        "w1": jax.random.uniform(k1, (n_observations, hidden), jnp.float32,
                                 -bound1, bound1),
        "b1": jax.random.uniform(k2, (1, hidden), jnp.float32, -bound1, bound1),
        # w2 stored as a (1, hidden) row so layer 2 is a VPU mul + lane reduce.
        "w2": jax.random.uniform(k3, (1, hidden), jnp.float32, -bound2, bound2),
        "b2": jax.random.uniform(k4, (1,), jnp.float32, -bound2, bound2),
    }


def _reference_no_dropout(params, x):
    h = jnp.maximum(x @ params["w1"] + params["b1"], 0.0)
    return h @ params["w2"].T + params["b2"]


if __name__ == "__main__":
    key = jax.random.PRNGKey(0)
    n_observations = 32
    batch = 8

    pkey, xkey, x2key = jax.random.split(key, 3)
    params = init_params(pkey, n_observations)
    x = jax.random.normal(xkey, (batch, n_observations), jnp.float32)

    # Eval path (dropout=False) — deterministic, checked against pure-JAX ref.
    y_eval = jax.block_until_ready(
        rewards_model_forward(params, x, dropout=False))
    y_ref = _reference_no_dropout(params, x)
    assert y_eval.shape == (batch, 1)
    assert jnp.allclose(y_eval, y_ref, atol=1e-5, rtol=1e-5)

    # Training path (dropout=True) — stochastic masking inside the kernel.
    # TODO(synk): mask uses jax.random (streamed in), so it will not bit-match
    # torch.nn.Dropout's RNG stream; p=0.1 inverted-dropout semantics match.
    y_train = jax.block_until_ready(
        rewards_model_forward(params, x, dropout=True, seed=42))
    assert y_train.shape == (batch, 1)
    assert jnp.all(jnp.isfinite(y_train))

    # Multi-tile grid + batch-padding path (B=20, tile_b=8 -> grid=3, pad to 24).
    xb = jax.random.normal(x2key, (20, n_observations), jnp.float32)
    y_big = jax.block_until_ready(
        rewards_model_forward(params, xb, dropout=False, tile_b=8))
    assert y_big.shape == (20, 1)
    assert jnp.allclose(y_big, _reference_no_dropout(params, xb),
                        atol=1e-5, rtol=1e-5)

    print("KERNEL_OK")
</pallas_src>

<mosaic_0001>
module attributes {stable_mosaic.version = 11 : i64} {
  func.func @_rewards_kernel(%arg0: i32, %arg1: memref<8x32xf32, #tpu.memory_space<vmem>>, %arg2: memref<32x128xf32, #tpu.memory_space<vmem>>, %arg3: memref<1x128xf32, #tpu.memory_space<vmem>>, %arg4: memref<1x128xf32, #tpu.memory_space<vmem>>, %arg5: memref<1xf32, #tpu.memory_space<smem>>, %arg6: memref<8x1xf32, #tpu.memory_space<vmem>>) attributes {dimension_semantics = [#tpu.dimension_semantics<parallel>], iteration_bounds = array<i64: 1>, scalar_prefetch = 0 : i64, scratch_operands = 0 : i64, tpu.core_type = #tpu.core_type<tc>, window_params = [{transform_indices = @transform_0, window_bounds = array<i64: 8, 32>}, {pipeline_mode = #tpu.pipeline_mode<synchronous>, transform_indices = @transform_1, window_bounds = array<i64: 32, 128>}, {pipeline_mode = #tpu.pipeline_mode<synchronous>, transform_indices = @transform_2, window_bounds = array<i64: 1, 128>}, {pipeline_mode = #tpu.pipeline_mode<synchronous>, transform_indices = @transform_3, window_bounds = array<i64: 1, 128>}, {transform_indices = @transform_4, window_bounds = array<i64: 1>}, {transform_indices = @transform_5, window_bounds = array<i64: 8, 1>}]} {
    %c0 = arith.constant 0 : index
    %c0_0 = arith.constant 0 : index
    %0 = vector.load %arg1[%c0, %c0_0] : memref<8x32xf32, #tpu.memory_space<vmem>>, vector<8x32xf32>
    %c0_1 = arith.constant 0 : index
    %c0_2 = arith.constant 0 : index
    %1 = vector.load %arg2[%c0_1, %c0_2] : memref<32x128xf32, #tpu.memory_space<vmem>>, vector<32x128xf32>
    %cst = arith.constant dense<0.000000e+00> : vector<8x128xf32>
    %2 = tpu.matmul %0, %1, %cst {dimension_numbers = #tpu.dot_dimension_numbers<[1], [0], [0], [1], [0, 0, 1, 1], [], []>} : vector<8x32xf32>, vector<32x128xf32>, vector<8x128xf32> -> vector<8x128xf32>
    %c0_3 = arith.constant 0 : index
    %c0_4 = arith.constant 0 : index
    %3 = vector.load %arg3[%c0_3, %c0_4] : memref<1x128xf32, #tpu.memory_space<vmem>>, vector<1x128xf32>
    %4 = vector.broadcast %3 : vector<1x128xf32> to vector<8x128xf32>
    %5 = arith.addf %2, %4 : vector<8x128xf32>
    %cst_5 = arith.constant 0.000000e+00 : f32
    %6 = vector.broadcast %cst_5 : f32 to vector<8x128xf32>
    %7 = arith.maximumf %5, %6 : vector<8x128xf32>
    %c0_6 = arith.constant 0 : index
    %c0_7 = arith.constant 0 : index
    %8 = vector.load %arg4[%c0_6, %c0_7] : memref<1x128xf32, #tpu.memory_space<vmem>>, vector<1x128xf32>
    %9 = vector.broadcast %8 : vector<1x128xf32> to vector<8x128xf32>
    %10 = arith.mulf %7, %9 : vector<8x128xf32>
    %cst_8 = arith.constant dense<0.000000e+00> : vector<8xf32>
    %11 = vector.multi_reduction <add>, %10, %cst_8 [1] : vector<8x128xf32> to vector<8xf32>
    %12 = vector.shape_cast %11 : vector<8xf32> to vector<8x1xf32>
    %c0_9 = arith.constant 0 : index
    %13 = memref.load %arg5[%c0_9] : memref<1xf32, #tpu.memory_space<smem>>
    %14 = vector.broadcast %13 : f32 to vector<8x1xf32>
    %15 = arith.addf %12, %14 : vector<8x1xf32>
    %c0_10 = arith.constant 0 : index
    %c0_11 = arith.constant 0 : index
    %16 = vector.load %arg6[%c0_10, %c0_11] : memref<8x1xf32, #tpu.memory_space<vmem>>, vector<8x1xf32>
    tpu.vector_store %arg6[%c0_10, %c0_11], %15 {strides = array<i32>} : memref<8x1xf32, #tpu.memory_space<vmem>>, vector<8x1xf32>,
    return
  }
  func.func @transform_0(%arg0: i32) -> (i32, i32) {
    %c0_i32 = arith.constant 0 : i32
    %c0_i32_0 = arith.constant 0 : i32
    return %arg0, %c0_i32 : i32, i32
  }
  func.func @transform_1(%arg0: i32) -> (i32, i32) {
    %c0_i32 = arith.constant 0 : i32
    %c0_i32_0 = arith.constant 0 : i32
    %c0_i32_1 = arith.constant 0 : i32
    return %c0_i32, %c0_i32_0 : i32, i32
  }
  func.func @transform_2(%arg0: i32) -> (i32, i32) {
    %c0_i32 = arith.constant 0 : i32
    %c0_i32_0 = arith.constant 0 : i32
    %c0_i32_1 = arith.constant 0 : i32
    return %c0_i32, %c0_i32_0 : i32, i32
  }
  func.func @transform_3(%arg0: i32) -> (i32, i32) {
    %c0_i32 = arith.constant 0 : i32
    %c0_i32_0 = arith.constant 0 : i32
    %c0_i32_1 = arith.constant 0 : i32
    return %c0_i32, %c0_i32_0 : i32, i32
  }
  func.func @transform_4(%arg0: i32) -> i32 {
    %c0_i32 = arith.constant 0 : i32
    %c0_i32_0 = arith.constant 0 : i32
    return %c0_i32 : i32
  }
  func.func @transform_5(%arg0: i32) -> (i32, i32) {
    %c0_i32 = arith.constant 0 : i32
    %c0_i32_0 = arith.constant 0 : i32
    return %arg0, %c0_i32 : i32, i32
  }
}

</mosaic_0001>

<bundles_post_ra>
// kernel: tpu_custom_call.1
= control target key start
LH: loop header
LB: loop body
LE: loop exit
PB: predicated region body
PF: predicated region fallthrough
CT: control target
= control target key end

     0   :  { %11 = vsyncpa [#allocation4], 0  ;;  %s278_s0 = inlined_call_operand.hbm [shape: f32[8,32], index: 0, kind: input, shape index: {}]   ;;  %s279_s1 = inlined_call_operand.hbm [shape: f32[32,128], index: 1, kind: input, shape index: {}]   ;;  %s280_s2 = inlined_call_operand.vmem [shape: f32[1,128], index: 2, kind: input, shape index: {}]   ;;  %s281_s3 = inlined_call_operand.vmem [shape: f32[1,128], index: 3, kind: input, shape index: {}]   ;;  %s282_s4 = inlined_call_operand.<no memory space> [shape: f32[1], index: 4, kind: input, shape index: {}]   ;;  %s283_s5 = inlined_call_operand.vmem [shape: f32[8,1], index: 5, kind: output, shape index: {}]  }
   0x1   :  { %12 = vsyncpa [#allocation6], 0  ;;  %s224_s18 = smov [#allocation3]   ;;  %s225_s20 = smov [#allocation5]  }
   0x2   :  { %s19_s19 = sshll.u32 %s224_s18, 4  ;;  %s28_s21 = sshll.u32 %s225_s20, 4  ;;  %s20_s19 = int_to_ptr.vmem [resolvable:$true] %s19_s19  ;;  %s29_s21 = int_to_ptr.vmem [resolvable:$true] %s28_s21 }
   0x3   :  { %s188_s22 = scalar_lea.vmem %s20_s19, 128  ;;  %p193_p1 = scmp.lt.s32.totalorder %s20_s19, %s20_s19 }
   0x4   :  { %p189_p0 = scmp.ne.s32.totalorder %s20_s19, %s188_s22  ;;  %p194_p2 = scmp.lt.s32.totalorder %s188_s22, %s188_s22 }
   0x6   :  { %p195_p3 = por %p194_p2, %p193_p1 }
   0x8   :  { %p196_p4 = pnand %p195_p3, %p189_p0 }
   0xa   :  { %199 = shalt.err (!%p196_p4)
}
   0xb   :  { %22 = dma.hbm_to_vmem [thread:$0]  %s278_s0, 128, %s20_s19, [#allocation4]  }
   0xc   :  { %s208_s25 = scalar_lea.vmem %s29_s21, 512  ;;  %p213_p6 = scmp.lt.s32.totalorder %s29_s21, %s29_s21 }
   0xd   :  { %p209_p5 = scmp.ne.s32.totalorder %s29_s21, %s208_s25  ;;  %p214_p7 = scmp.lt.s32.totalorder %s208_s25, %s208_s25 }
   0xf   :  { %p215_p8 = por %p214_p7, %p213_p6 }
  0x11   :  { %p216_p9 = pnand %p215_p8, %p209_p5 }
  0x13   :  { %219 = shalt.err (!%p216_p9)
}
  0x14   :  { %s226_s26 = smov 128   ;;  %s227_s27 = smov 8  }
  0x15   :  { %34 = dma.hbm_to_vmem [thread:$0]  %s279_s1, 512, %s29_s21, [#allocation6], %s226_s26, %s226_s26, %s227_s27  }
  0x16   :  { %220 = dma.done.wait [#allocation4], 128  }
  0x17   :  { %221 = vsyncadd [#allocation4], 4294967168 }
  0x18   :  { %222 = dma.done.wait [#allocation6], 512  }
  0x19   :  { %223 = vsyncadd [#allocation6], 4294966784  ;;  %v228_v0 = vmov 0.0   ;;  %vm229_vm0 = vmmov 0   ;;  %v51_v1 = vld [vmem:[#allocation5 + $0x18] sm:$0xff]  ;;  %v50_v2 = vld [vmem:[#allocation5 + $0x10] sm:$0xff]  ;;  %v145_v13 = vstv %s282_s4 }
  0x1a   :  { %163 = vmatprep.subr.mxu0 %v228_v0  ;;  %171 = vmatprep.mubr.msk.f32.mxu0 %vm229_vm0, %v228_v0  ;;  %v49_v3 = vld [vmem:[#allocation5 + $0x8] sm:$0xff]  ;;  %v48_v4 = vld [vmem:[#allocation5] sm:$0xff]  ;;  %v47_v5 = vld [vmem:[#allocation3] sm:$0xff]  ;;  %vm59_vm1 = vcmask 261120   ;;  %vm147_vm2 = vcmask 7168  }
  0x1b   :  { %164 = vmatpush3.msra.mxu0 %v51_v1  ;;  %v155_v6 = vld [vmem:[%s280_s2] ss:$0 sm:$0xff] }
  0x1c   :  { %165 = vmatprep.subr.mxu0 %v228_v0  ;;  %v157_v10 = vld [vmem:[%s281_s3] ss:$0 sm:$0xff] }
  0x1d   :  { %166 = vmatpush3.msra.mxu0 %v50_v2 }
  0x1e   :  { %167 = vmatprep.subr.mxu0 %v228_v0 }
  0x1f   :  { %168 = vmatpush3.msra.mxu0 %v49_v3 }
  0x20   :  { %169 = vmatprep.subr.mxu0 %v228_v0 }
  0x21   :  { %170 = vmatpush3.msra.mxu0 %v48_v4 }
  0x22   :  { %172 = vmatmul.mubr.msk.f32.vlgmr.msra.gmra.mxu0 %vm59_vm1, %v47_v5 }
  0xe2   :  { %v129_v7 = vpop.f32.mrf.mxu0 }
  0xe3   :  { %v130_v8 = vadd.f32 %v155_v6, %v129_v7 }
  0xe4   :  { %v173_v9 = vpop.f32.mrf.mxu0 }
  0xe5   :  { %v133_v11 = vmax.f32 %v130_v8, 0.0 }
  0xe7   :  { %v141_v12 = vmul.f32 %v157_v10, %v133_v11 }
  0xe9   :  { %142 = vadd.xlane.f32.xlu0 %v141_v12 }
 0x172   :  { %v143_v14 = vpop.xlane.xlu0 %142 }
 0x173   :  { %v146_v15 = vadd.f32 %v145_v13, %v143_v14 }
 0x175   :  { %148 = vst.msk [vmem:[%s283_s5] sm:$0xff] %vm147_vm2, %v146_v15 }
 0x176   :  { %153 = vsyncpa [#allocation4], 1 }
 0x177   :  { %154 = vsyncpa [#allocation6], 1 }

</bundles_post_ra>
